<compile_context>
chip_gen: v7x
topology: tpu7x:2x2x1
jax: 0.10.0
libtpu: 0.0.40
codegen_flags: <defaults>
</compile_context>

<pallas_src>
import functools

import jax
import jax.numpy as jnp
from jax.experimental import pallas as pl
from jax.experimental.pallas import tpu as pltpu


_MAX_TILE_ROWS = 16384   # sanity cap only; the VMEM byte budget is the real limiter


def _cdiv(a, b):
    return -(-a // b)


def _round_up8(x):
    return ((int(x) + 7) // 8) * 8


def _vmem_capacity_bytes():
    """Physical VMEM of the attached TPU; conservative (v7x-sized) fallback."""
    try:
        cap = getattr(pltpu.get_tpu_info(), "vmem_capacity_bytes", None)
        if cap:
            return int(cap)
    except Exception:
        pass
    return 64 * 1024 * 1024


def _budgets():
    """(tile byte budget, vmem_limit_bytes) per TPU generation."""
    cap = _vmem_capacity_bytes()
    if cap >= 96 * 1024 * 1024:              # v5e / v6e: 128 MiB VMEM
        return 48 * 1024 * 1024, 96 * 1024 * 1024
    # v7x (64 MiB, shared with Mosaic internal scratch) or unknown
    return 20 * 1024 * 1024, min(48 * 1024 * 1024, cap)


def _pick_tile_rows(batch, dim, itemsize, budget):
    """Largest multiple-of-8 row tile fitting the VMEM byte budget.

    Per-row footprint: 3 inputs x 2 pipeline buffers of HBM-dtype tile rows,
    plus in-kernel f32 upcasts / temporaries (so bf16 inputs don't oversize the
    tile), plus the (rows, 1) f32 accumulator padded to 128 lanes.
    """
    f32 = 4
    bytes_per_row = 3 * 2 * dim * itemsize + 6 * dim * f32 + 128 * f32
    rows = budget // bytes_per_row
    rows = max(8, (rows // 8) * 8)
    rows = min(rows, _MAX_TILE_ROWS)
    return min(rows, _round_up8(batch))


def _finish(i, out_ref, acc_ref):
    @pl.when(i == pl.num_programs(1) - 1)
    def _():
        out_ref[...] = jnp.full(out_ref.shape, jnp.sum(acc_ref[...]), jnp.float32)


def _mask_rows(c, i, tile_rows, batch, losses):
    step = c * pl.num_programs(1) + i
    row = step * tile_rows + jax.lax.broadcasted_iota(jnp.int32, losses.shape, 0)
    return jnp.where(row < batch, losses, 0.0)


def _euclidean_kernel(margin, batch, tile_rows, a_ref, p_ref, n_ref, out_ref, acc_ref):
    c = pl.program_id(0)
    i = pl.program_id(1)

    @pl.when(i == 0)
    def _():
        acc_ref[...] = jnp.zeros_like(acc_ref)

    a = a_ref[...].astype(jnp.float32)
    p = p_ref[...].astype(jnp.float32)
    n = n_ref[...].astype(jnp.float32)

    # pos_dist - neg_dist == sum((a-p)^2 - (a-n)^2) == sum((n - p) * (2a - p - n))
    # -> a single cross-lane reduction per tile.
    diff = jnp.sum((n - p) * (2.0 * a - p - n), axis=1, keepdims=True)   # (TB, 1)
    losses = jnp.maximum(diff + margin, 0.0)

    # Mask ragged / out-of-range rows (no wrapper-side padding).
    acc_ref[...] += _mask_rows(c, i, tile_rows, batch, losses)
    _finish(i, out_ref, acc_ref)


def _cosine_kernel(margin, batch, tile_rows, a_ref, p_ref, n_ref, out_ref, acc_ref):
    eps = 1e-8  # torch.nn.functional.cosine_similarity default eps
    c = pl.program_id(0)
    i = pl.program_id(1)

    @pl.when(i == 0)
    def _():
        acc_ref[...] = jnp.zeros_like(acc_ref)

    a = a_ref[...].astype(jnp.float32)
    p = p_ref[...].astype(jnp.float32)
    n = n_ref[...].astype(jnp.float32)

    a_sq = jnp.sum(a * a, axis=1, keepdims=True)   # (TB, 1)
    p_sq = jnp.sum(p * p, axis=1, keepdims=True)
    n_sq = jnp.sum(n * n, axis=1, keepdims=True)
    ap = jnp.sum(a * p, axis=1, keepdims=True)
    an = jnp.sum(a * n, axis=1, keepdims=True)

    # sim = x1.x2 / max(||x1||*||x2||, eps); rsqrt(max(sq1*sq2, eps^2)) runs on the EUP.
    pos_sim = ap * jax.lax.rsqrt(jnp.maximum(a_sq * p_sq, eps * eps))
    neg_sim = an * jax.lax.rsqrt(jnp.maximum(a_sq * n_sq, eps * eps))

    # (1 - pos_sim) - (1 - neg_sim) == neg_sim - pos_sim
    losses = jnp.maximum(neg_sim - pos_sim + margin, 0.0)

    acc_ref[...] += _mask_rows(c, i, tile_rows, batch, losses)
    _finish(i, out_ref, acc_ref)


def triplet_loss(anchor, positive, negative, margin=0.5, distance="euclidean",
                 tile_rows=None):
    """Pallas TPU implementation of TripletLoss.forward. Returns a scalar."""
    assert anchor.shape == positive.shape == negative.shape
    assert anchor.ndim == 2, "expected (B, D) embeddings"
    batch, dim = anchor.shape
    itemsize = jnp.dtype(anchor.dtype).itemsize

    tile_budget, vmem_limit = _budgets()
    if tile_rows is None:
        tile_rows = _pick_tile_rows(batch, dim, itemsize, tile_budget)
    else:
        tile_rows = max(8, (int(tile_rows) // 8) * 8)

    # Rebalance so the last (ragged) block is not mostly empty.
    total_blocks = _cdiv(batch, tile_rows)
    tile_rows = min(tile_rows, max(8, _round_up8(_cdiv(batch, total_blocks))))
    total_blocks = _cdiv(batch, tile_rows)

    # Leading "parallel" axis -> one partial per TensorCore (2x on v7x megacore).
    ncores = 2 if total_blocks >= 2 else 1
    steps_per_core = _cdiv(total_blocks, ncores)

    if distance == "euclidean":
        body = functools.partial(_euclidean_kernel, float(margin), batch, tile_rows)
        flops = 6 * batch * dim
        transcendentals = 0
    elif distance == "cosine":
        body = functools.partial(_cosine_kernel, float(margin), batch, tile_rows)
        flops = 10 * batch * dim
        transcendentals = 2 * batch
    else:
        raise ValueError("Unsupported distance metric")

    def in_map(c, i):
        # Clamp: blocks past the end (odd block count split across 2 cores) re-read
        # the last valid block; the in-kernel row mask zeroes their contribution.
        return (jnp.minimum(c * steps_per_core + i, total_blocks - 1), 0)

    tile_spec = lambda: pl.BlockSpec((tile_rows, dim), in_map)

    out = pl.pallas_call(
        body,
        out_shape=jax.ShapeDtypeStruct((ncores * 8, 128), jnp.float32),
        grid_spec=pltpu.PrefetchScalarGridSpec(
            num_scalar_prefetch=0,
            grid=(ncores, steps_per_core),
            in_specs=[tile_spec(), tile_spec(), tile_spec()],
            out_specs=pl.BlockSpec((8, 128), lambda c, i: (c, 0)),
            scratch_shapes=[pltpu.VMEM((tile_rows, 1), jnp.float32)],
        ),
        compiler_params=pltpu.CompilerParams(
            dimension_semantics=("parallel", "arbitrary"),
            vmem_limit_bytes=vmem_limit,
        ),
        cost_estimate=pl.CostEstimate(
            flops=flops,
            transcendentals=transcendentals,
            bytes_accessed=3 * batch * dim * itemsize + ncores * 8 * 128 * 4,
        ),
    )(anchor, positive, negative)

    # One partial per core lives at out[8*c, 0]; finish the mean in the wrapper.
    return jnp.sum(out[::8, 0]) / batch


def _reference(anchor, positive, negative, margin=0.5, distance="euclidean"):
    a = anchor.astype(jnp.float32)
    p = positive.astype(jnp.float32)
    n = negative.astype(jnp.float32)
    if distance == "euclidean":
        pos = jnp.sum((a - p) ** 2, axis=1)
        neg = jnp.sum((a - n) ** 2, axis=1)
    else:
        eps = 1e-8
        an_ = jnp.linalg.norm(a, axis=1)
        pn_ = jnp.linalg.norm(p, axis=1)
        nn_ = jnp.linalg.norm(n, axis=1)
        pos = 1.0 - jnp.sum(a * p, axis=1) / jnp.maximum(an_ * pn_, eps)
        neg = 1.0 - jnp.sum(a * n, axis=1) / jnp.maximum(an_ * nn_, eps)
    return jnp.mean(jnp.maximum(pos - neg + margin, 0.0))


if __name__ == "__main__":
    B, D = 20, 128  # small batch; B deliberately NOT a multiple of the 8-row tile
    key = jax.random.PRNGKey(0)
    ka, kp, kn = jax.random.split(key, 3)
    anchor = jax.random.normal(ka, (B, D), dtype=jnp.float32)
    positive = jax.random.normal(kp, (B, D), dtype=jnp.float32)
    negative = jax.random.normal(kn, (B, D), dtype=jnp.float32)

    ref = _reference(anchor, positive, negative, 0.5, "euclidean")

    # Multi-step grid with ragged batch: exercises 2-core split + clamp + row mask.
    loss = triplet_loss(anchor, positive, negative, margin=0.5,
                        distance="euclidean", tile_rows=8)
    jax.block_until_ready(loss)
    assert jnp.allclose(loss, ref, rtol=1e-4, atol=1e-5), (loss, ref)

    # Auto-picked tile (single ragged block, single-core grid).
    loss_auto = triplet_loss(anchor, positive, negative, margin=0.5,
                             distance="euclidean")
    jax.block_until_ready(loss_auto)
    assert jnp.allclose(loss_auto, ref, rtol=1e-4, atol=1e-5), (loss_auto, ref)

    # Cosine branch.
    ref_cos = _reference(anchor, positive, negative, 0.5, "cosine")
    loss_cos = triplet_loss(anchor, positive, negative, margin=0.5,
                            distance="cosine", tile_rows=8)
    jax.block_until_ready(loss_cos)
    assert jnp.allclose(loss_cos, ref_cos, rtol=1e-4, atol=1e-5), (loss_cos, ref_cos)

    # bf16 inputs: half the HBM traffic, in-kernel f32 accumulation.
    loss_bf16 = triplet_loss(anchor.astype(jnp.bfloat16),
                             positive.astype(jnp.bfloat16),
                             negative.astype(jnp.bfloat16),
                             margin=0.5, distance="euclidean", tile_rows=8)
    jax.block_until_ready(loss_bf16)
    assert jnp.allclose(loss_bf16, ref, rtol=5e-2, atol=5e-2), (loss_bf16, ref)

    print("KERNEL_OK")
</pallas_src>

<mosaic_0001>
module attributes {stable_mosaic.version = 11 : i64} {
  func.func @_euclidean_kernel(%arg0: i32, %arg1: i32, %arg2: memref<8x128xf32, #tpu.memory_space<vmem>>, %arg3: memref<8x128xf32, #tpu.memory_space<vmem>>, %arg4: memref<8x128xf32, #tpu.memory_space<vmem>>, %arg5: memref<8x128xf32, #tpu.memory_space<vmem>>, %arg6: memref<8x1xf32, #tpu.memory_space<vmem>>) attributes {dimension_semantics = [#tpu.dimension_semantics<parallel>, #tpu.dimension_semantics<arbitrary>], iteration_bounds = array<i64: 2, 2>, scalar_prefetch = 0 : i64, scratch_operands = 1 : i64, tpu.core_type = #tpu.core_type<tc>, window_params = [{transform_indices = @transform_0, window_bounds = array<i64: 8, 128>}, {transform_indices = @transform_1, window_bounds = array<i64: 8, 128>}, {transform_indices = @transform_2, window_bounds = array<i64: 8, 128>}, {transform_indices = @transform_3, window_bounds = array<i64: 8, 128>}]} {
    %c0_i32 = arith.constant 0 : i32
    %0 = arith.cmpi eq, %arg1, %c0_i32 : i32
    %1 = arith.extui %0 : i1 to i32
    %c0_i32_0 = arith.constant 0 : i32
    %2 = arith.cmpi ne, %1, %c0_i32_0 : i32
    scf.if %2 {
      %cst_15 = arith.constant 0.000000e+00 : f32
      %34 = vector.broadcast %cst_15 : f32 to vector<8x1xf32>
      %c0_16 = arith.constant 0 : index
      %c0_17 = arith.constant 0 : index
      %35 = vector.load %arg6[%c0_16, %c0_17] : memref<8x1xf32, #tpu.memory_space<vmem>>, vector<8x1xf32>
      tpu.vector_store %arg6[%c0_16, %c0_17], %34 {strides = array<i32>} : memref<8x1xf32, #tpu.memory_space<vmem>>, vector<8x1xf32>,
    } else {
    }
    %c0 = arith.constant 0 : index
    %c0_1 = arith.constant 0 : index
    %3 = vector.load %arg2[%c0, %c0_1] : memref<8x128xf32, #tpu.memory_space<vmem>>, vector<8x128xf32>
    %c0_2 = arith.constant 0 : index
    %c0_3 = arith.constant 0 : index
    %4 = vector.load %arg3[%c0_2, %c0_3] : memref<8x128xf32, #tpu.memory_space<vmem>>, vector<8x128xf32>
    %c0_4 = arith.constant 0 : index
    %c0_5 = arith.constant 0 : index
    %5 = vector.load %arg4[%c0_4, %c0_5] : memref<8x128xf32, #tpu.memory_space<vmem>>, vector<8x128xf32>
    %6 = arith.subf %5, %4 : vector<8x128xf32>
    %cst = arith.constant 2.000000e+00 : f32
    %7 = vector.broadcast %cst : f32 to vector<8x128xf32>
    %8 = arith.mulf %7, %3 : vector<8x128xf32>
    %9 = arith.subf %8, %4 : vector<8x128xf32>
    %10 = arith.subf %9, %5 : vector<8x128xf32>
    %11 = arith.mulf %6, %10 : vector<8x128xf32>
    %cst_6 = arith.constant dense<0.000000e+00> : vector<8xf32>
    %12 = vector.multi_reduction <add>, %11, %cst_6 [1] : vector<8x128xf32> to vector<8xf32>
    %13 = vector.shape_cast %12 : vector<8xf32> to vector<8x1xf32>
    %cst_7 = arith.constant 5.000000e-01 : f32
    %14 = vector.broadcast %cst_7 : f32 to vector<8x1xf32>
    %15 = arith.addf %13, %14 : vector<8x1xf32>
    %cst_8 = arith.constant 0.000000e+00 : f32
    %16 = vector.broadcast %cst_8 : f32 to vector<8x1xf32>
    %17 = arith.maximumf %15, %16 : vector<8x1xf32>
    %c0_9 = arith.constant 0 : index
    %c0_10 = arith.constant 0 : index
    %18 = vector.load %arg6[%c0_9, %c0_10] : memref<8x1xf32, #tpu.memory_space<vmem>>, vector<8x1xf32>
    %c2_i32 = arith.constant 2 : i32
    %19 = arith.muli %arg0, %c2_i32 : i32
    %20 = arith.addi %19, %arg1 : i32
    %c8_i32 = arith.constant 8 : i32
    %21 = arith.muli %20, %c8_i32 : i32
    %22 = tpu.iota {dimensions = array<i32: 0>} : vector<8x1xi32>
    %23 = vector.broadcast %21 : i32 to vector<8x1xi32>
    %24 = arith.addi %23, %22 : vector<8x1xi32>
    %c20_i32 = arith.constant 20 : i32
    %25 = vector.broadcast %c20_i32 : i32 to vector<8x1xi32>
    %26 = arith.cmpi slt, %24, %25 : vector<8x1xi32>
    %cst_11 = arith.constant 0.000000e+00 : f32
    %27 = vector.broadcast %cst_11 : f32 to vector<8x1xf32>
    %28 = arith.select %26, %17, %27 : vector<8x1xi1>, vector<8x1xf32>
    %29 = arith.addf %18, %28 : vector<8x1xf32>
    %c0_12 = arith.constant 0 : index
    %c0_13 = arith.constant 0 : index
    %30 = vector.load %arg6[%c0_12, %c0_13] : memref<8x1xf32, #tpu.memory_space<vmem>>, vector<8x1xf32>
    tpu.vector_store %arg6[%c0_12, %c0_13], %29 {strides = array<i32>} : memref<8x1xf32, #tpu.memory_space<vmem>>, vector<8x1xf32>,
    %c1_i32 = arith.constant 1 : i32
    %31 = arith.cmpi eq, %arg1, %c1_i32 : i32
    %32 = arith.extui %31 : i1 to i32
    %c0_i32_14 = arith.constant 0 : i32
    %33 = arith.cmpi ne, %32, %c0_i32_14 : i32
    scf.if %33 {
      %c0_15 = arith.constant 0 : index
      %c0_16 = arith.constant 0 : index
      %34 = vector.load %arg6[%c0_15, %c0_16] : memref<8x1xf32, #tpu.memory_space<vmem>>, vector<8x1xf32>
      %35 = vector.shape_cast %34 : vector<8x1xf32> to vector<1x8x1xf32>
      %cst_17 = arith.constant dense<0.000000e+00> : vector<1xf32>
      %36 = vector.multi_reduction <add>, %35, %cst_17 [1, 2] : vector<1x8x1xf32> to vector<1xf32>
      %37 = vector.shape_cast %36 : vector<1xf32> to vector<1x1x1xf32>
      %38 = vector.extract %37[0, 0, 0] : f32 from vector<1x1x1xf32>
      %39 = vector.broadcast %38 : f32 to vector<8x128xf32>
      %c0_18 = arith.constant 0 : index
      %c0_19 = arith.constant 0 : index
      %40 = vector.load %arg5[%c0_18, %c0_19] : memref<8x128xf32, #tpu.memory_space<vmem>>, vector<8x128xf32>
      tpu.vector_store %arg5[%c0_18, %c0_19], %39 {strides = array<i32>} : memref<8x128xf32, #tpu.memory_space<vmem>>, vector<8x128xf32>,
    } else {
    }
    return
  }
  func.func @transform_0(%arg0: i32, %arg1: i32) -> (i32, i32) {
    %c2_i32 = arith.constant 2 : i32
    %0 = arith.muli %arg0, %c2_i32 : i32
    %1 = arith.addi %0, %arg1 : i32
    %c2_i32_0 = arith.constant 2 : i32
    %2 = arith.minsi %1, %c2_i32_0 : i32
    %c0_i32 = arith.constant 0 : i32
    %c0_i32_1 = arith.constant 0 : i32
    return %2, %c0_i32 : i32, i32
  }
  func.func @transform_1(%arg0: i32, %arg1: i32) -> (i32, i32) {
    %c2_i32 = arith.constant 2 : i32
    %0 = arith.muli %arg0, %c2_i32 : i32
    %1 = arith.addi %0, %arg1 : i32
    %c2_i32_0 = arith.constant 2 : i32
    %2 = arith.minsi %1, %c2_i32_0 : i32
    %c0_i32 = arith.constant 0 : i32
    %c0_i32_1 = arith.constant 0 : i32
    return %2, %c0_i32 : i32, i32
  }
  func.func @transform_2(%arg0: i32, %arg1: i32) -> (i32, i32) {
    %c2_i32 = arith.constant 2 : i32
    %0 = arith.muli %arg0, %c2_i32 : i32
    %1 = arith.addi %0, %arg1 : i32
    %c2_i32_0 = arith.constant 2 : i32
    %2 = arith.minsi %1, %c2_i32_0 : i32
    %c0_i32 = arith.constant 0 : i32
    %c0_i32_1 = arith.constant 0 : i32
    return %2, %c0_i32 : i32, i32
  }
  func.func @transform_3(%arg0: i32, %arg1: i32) -> (i32, i32) {
    %c0_i32 = arith.constant 0 : i32
    %c0_i32_0 = arith.constant 0 : i32
    return %arg0, %c0_i32 : i32, i32
  }
}

</mosaic_0001>

<bundles_post_ra>
// kernel: tpu_custom_call.1
= control target key start
LH: loop header
LB: loop body
LE: loop exit
PB: predicated region body
PF: predicated region fallthrough
CT: control target
= control target key end

     0   :  { %s1203_s0 = inlined_call_operand.hbm [shape: f32[20,128], index: 0, kind: input, shape index: {}]   ;;  %s1204_s1 = inlined_call_operand.hbm [shape: f32[20,128], index: 1, kind: input, shape index: {}]   ;;  %s1205_s2 = inlined_call_operand.hbm [shape: f32[20,128], index: 2, kind: input, shape index: {}]   ;;  %s1206_s3 = inlined_call_operand.hbm [shape: f32[16,128], index: 3, kind: output, shape index: {}]  }
   0x1   :  { %1218 = sst [smem:[#allocation21_spill]] %s1204_s1 }
   0x2   :  { %8 = vsyncpa [#allocation4], 0 }
   0x3   :  { %10 = vsyncpa [#allocation4 + $0x1], 0 }
   0x4   :  { %11 = vsyncpa [#allocation7], 0 }
   0x5   :  { %13 = vsyncpa [#allocation7 + $0x1], 0 }
   0x6   :  { %14 = vsyncpa [#allocation5], 0 }
   0x7   :  { %16 = vsyncpa [#allocation5 + $0x1], 0  ;;  %s893_s12 = smov 0   ;;  %s895_s13 = smov 0  }
   0x8   :  { %s897_s14 = smov 0   ;;  %s899_s15 = smov 0  }
   0x9   :  { %s901_s16 = smov 0   ;;  %s903_s17 = smov 0  }
   0xa   :  { %s905_s18 = smov 0   ;;  %s907_s19 = smov 0  }
   0xb   :  { %s909_s20 = smov 0   ;;  %s911_s21 = smov 0  }
   0xc   :  { %s913_s22 = smov 0  }
   0xd LB: > { %1219 = sst [smem:[#allocation13_spill]] %s834_s14  ;;  %s949_s23 = sadd.s32 4294967295, %s866_s22   ;;  %s866_s22 = sphi %s913_s22, %s22_s22   ;;  %s862_s21 = sphi %s911_s21, %s1250_s21   ;;  %s858_s20 = sphi %s909_s20, %s1249_s20   ;;  %s854_s19 = sphi %s907_s19, %s1248_s19   ;;  %s850_s18 = sphi %s905_s18, %s1247_s18   ;;  %s846_s17 = sphi %s903_s17, %s1246_s17   ;;  %s842_s16 = sphi %s901_s16, %s1254_s16   ;;  %s838_s15 = sphi %s899_s15, %s1253_s15   ;;  %s834_s14 = sphi %s897_s14, %s1244_s14   ;;  %s830_s13 = sphi %s895_s13, %s1252_s13   ;;  %s826_s12 = sphi %s893_s12, %s1251_s12  }
   0xe   : > { %1220 = sst [smem:[#allocation14_spill]] %s846_s17  ;;  %s504_s24 = sadd.s32 4294967294, %s866_s22  }
   0xf   : > { %1221 = sst [smem:[#allocation15_spill]] %s858_s20  ;;  %s31_s25 = sadd.s32 1, %s858_s20 }
  0x10   : > { %1222 = sst [smem:[#allocation16_spill]] %s862_s21  ;;  %s34_s26 = sadd.s32 1, %s862_s21 }
  0x11   : > { %p32_p0 = scmp.ge.s32.totalorder %s31_s25, 2  ;;  %s505_s27 = sshll.u32 %s862_s21, 1 }
  0x12   : > { %s39_s28 = sadd.s32 %s858_s20, %s505_s27  ;;  %s49_s29 = sadd.s32 1, %s846_s17 }
  0x13   : > { %s1256_s25 = smov (%p32_p0, %s31_s25), 0  ;;  %s1258_s26 = smov (!%p32_p0, %s34_s26), %s862_s21 }
  0x14   : > { %1223 = sst [smem:[#allocation17_spill]] %s1256_s25  ;;  %p40_p1 = scmp.lt.s32.totalorder %s39_s28, 2 }
  0x15   : > { %p56_p2 = scmp.ne.s32.totalorder %s846_s17, %s842_s16  ;;  %p36_p3 = scmp.ge.s32.totalorder %s1258_s26, 2 }
  0x16   : > { %p57_p4 = scmp.eq.s32.totalorder %s866_s22, 0  ;;  %s1260_s28 = smov (!%p40_p1, %s39_s28), 2 }
  0x17   : > { %s1262_s26 = smov (%p36_p3, %s1258_s26), 0  ;;  %p62_p6 = scmp.ne.s32.totalorder %s842_s16, %s838_s15 }
  0x18   : > { %1224 = sst [smem:[#allocation18_spill]] %s1262_s26  ;;  %p965_p5 = por %p57_p4, %p56_p2 }
  0x19   : > { %s506_s4 = sshll.u32 %s1262_s26, 1  ;;  %p63_p7 = scmp.eq.s32.totalorder %s949_s23, 0 }
  0x1a   : > { %s43_s5 = sadd.s32 %s506_s4, %s1256_s25  ;;  %s140_s6 = ssub.s32 %s862_s21, %s1262_s26 }
  0x1b   : > { %p44_p8 = scmp.lt.s32.totalorder %s43_s5, 2  ;;  %p976_p9 = por %p63_p7, %p62_p6 }
  0x1c   : > { %p141_p10 = scmp.eq.s32.totalorder %s140_s6, 0  ;;  %s143_s8 = sadd.s32 1, %s834_s14 }
  0x1d   : > { %s1226_s7 = scalar_select %p976_p9, 1, 0 }
  0x1e   : > { %s1264_s5 = smov (!%p44_p8, %s43_s5), 2  ;;  %p153_p11 = scmp.ne.s32.totalorder %s834_s14, %s830_s13 }
  0x1f   : > { %s982_s9 = scalar_select %p141_p10, %s834_s14, %s143_s8  }
  0x20   : > { %s46_s10 = ssub.s32 %s1260_s28, %s1264_s5  ;;  %p154_p13 = scmp.eq.s32.totalorder %s949_s23, 3 }
  0x21   : > { %1227 = sst [smem:[#allocation19_spill]] %s982_s9  ;;  %p47_p12 = scmp.eq.s32.totalorder %s46_s10, 0 }
  0x22   : > { %p159_p0 = scmp.ne.s32.totalorder %s830_s13, %s826_s12  ;;  %p160_p1 = scmp.eq.s32.totalorder %s504_s24, 3 }
  0x23   : > { %s992_s11 = scalar_select %p47_p12, %s846_s17, %s49_s29  }
  0x24   : > { %p994_p2 = por %p154_p13, %p153_p11  ;;  %p998_p3 = por %p160_p1, %p159_p0 }
  0x25   : > { %1228 = sst [smem:[#allocation20_spill]] %s992_s11  ;;  %p559_p4 = scmp.lt.s32.totalorder %s866_s22, 4 }
  0x26   : > { %s1229_s15 = scalar_select %p994_p2, 1, 0 }
  0x27   : > { %s1230_s27 = scalar_select %p998_p3, 1, 0 }
  0x28   : > { %s1208_s4 = sand.u32 1, %s846_s17   ;;  %s1004_s5 = sshll.u32 %s1260_s28, 7 }
  0x29   : > { %s1008_s6 = sshll.u32 %s1208_s4, 3  ;;  %p1012_p6 = pnand %p559_p4, %p965_p5 }
  0x2a   : > { %s202_s29 = sand.u32 1, %s866_s22   ;;  %s1232_s1 = sld [smem:[#allocation21_spill]] }
  0x2b   : > { %s1231_s24 = scalar_select %p1012_p6, 1, 0 }
  0x2c   : > { %s206_s28 = scalar_lea.vmem [#allocation6], %s1008_s6  ;;  %s1027_s30 = scalar_lea.sflag [#allocation7], %s202_s29 }
  0x2d   : > { %s217_s4 = sshll.u32 %s206_s28, 4  ;;  %p1033_p8 = pneg %p1012_p6  ;;  %s1024_s4 = int_to_ptr.vmem [resolvable:$true] %s217_s4 }
  0x30   : > { %s1021_s26 = scalar_lea.hbm %s1232_s1, %s1004_s5  ;;  %s655_s28 = scalar_lea.hbm %s1232_s1, 384 }
  0x31   : > { %s650_s25 = scalar_lea.hbm %s1021_s26, 128  ;;  %p656_p12 = scmp.lt.u32.totalorder %s1021_s26, %s1232_s1 }
  0x32   : > { %p651_p5 = scmp.ne.s32.totalorder %s1021_s26, %s650_s25  ;;  %p657_p13 = scmp.lt.u32.totalorder %s655_s28, %s650_s25 }
  0x33   : > { %p659_p1 = scmp.lt.u32.totalorder %s650_s25, %s1021_s26 }
  0x34   : > { %p653_p10 = pnand %p1033_p8, %p651_p5  ;;  %p658_p0 = por %p657_p13, %p656_p12 }
  0x36   : > { %p654_p11 = pneg %p653_p10  ;;  %p660_p4 = por %p659_p1, %p658_p0 }
  0x38   : > { %p661_p7 = pnand %p660_p4, %p654_p11 }
  0x3a   : > { %664 = shalt.err (!%p661_p7)
}
  0x3b   : > { %s665_s29 = scalar_lea.vmem %s1024_s4, 128  ;;  %s868_s8 = smov [#allocation6]  }
  0x3c   : > { %p666_p5 = scmp.ne.s32.totalorder %s1024_s4, %s665_s29  ;;  %s670_s10 = sshll.u32 %s868_s8, 4  ;;  %s671_s10 = int_to_ptr.vmem [resolvable:$false] %s670_s10 }
  0x3d   : > { %s672_s20 = scalar_lea.vmem %s671_s10, 256  ;;  %p673_p2 = scmp.lt.s32.totalorder %s1024_s4, %s671_s10 }
  0x3e   : > { %p668_p10 = pnand %p666_p5, %p1033_p8  ;;  %p674_p9 = scmp.lt.s32.totalorder %s672_s20, %s665_s29 }
  0x40   : > { %p669_p3 = pneg %p668_p10  ;;  %p675_p12 = por %p674_p9, %p673_p2 }
  0x42   : > { %p676_p13 = pnand %p675_p12, %p669_p3 }
  0x44   : > { %679 = shalt.err (!%p676_p13)
}
  0x45   : > { %551 = dma.hbm_to_vmem [thread:$0]  (!%p1012_p6), %s1021_s26, 128, %s1024_s4, %s1027_s30  }
  0x46   : > { %p244_p7 = scmp.lt.s32.totalorder %s866_s22, 5  ;;  %p1234_p11 = scmp.ge.s32.totalorder %s866_s22, 1 }
  0x47   : > { %s1068_s29 = scalar_lea.hbm %s1203_s0, %s1004_s5  ;;  %s184_s8 = scalar_lea.vmem [#allocation3], %s1008_s6 }
  0x48   : > { %p1060_p0 = pnand %p1234_p11, %p244_p7  ;;  %s195_s10 = sshll.u32 %s184_s8, 4  ;;  %s196_s10 = int_to_ptr.vmem [resolvable:$true] %s195_s10 }
  0x49   : > { %s1236_s20 = sand.u32 1, %s846_s17   ;;  %s680_s4 = scalar_lea.hbm %s1068_s29, 128 }
  0x4a   : > { %s1235_s25 = scalar_select %p1060_p0, 1, 0 }
  0x4b   : > { %s181_s26 = scalar_lea.sflag [#allocation4], %s1236_s20  ;;  %p681_p9 = scmp.ne.s32.totalorder %s1068_s29, %s680_s4 }
  0x4c   : > { %s685_s11 = scalar_lea.hbm %s1203_s0, 384  ;;  %p686_p1 = scmp.lt.u32.totalorder %s1068_s29, %s1203_s0 }
  0x4d   : > { %p683_p2 = pnand %p681_p9, %p1033_p8  ;;  %p687_p4 = scmp.lt.u32.totalorder %s685_s11, %s680_s4 }
  0x4e   : > { %p689_p10 = scmp.lt.u32.totalorder %s680_s4, %s1068_s29 }
  0x4f   : > { %p684_p3 = pneg %p683_p2  ;;  %p688_p5 = por %p687_p4, %p686_p1 }
  0x51   : > { %p690_p12 = por %p689_p10, %p688_p5 }
  0x53   : > { %p691_p13 = pnand %p690_p12, %p684_p3 }
  0x55   : > { %694 = shalt.err (!%p691_p13)
}
  0x56   : > { %s695_s8 = scalar_lea.vmem %s196_s10, 128  ;;  %s869_s20 = smov [#allocation3]  }
  0x57   : > { %p696_p7 = scmp.ne.s32.totalorder %s196_s10, %s695_s8  ;;  %s700_s17 = sshll.u32 %s869_s20, 4  ;;  %s701_s17 = int_to_ptr.vmem [resolvable:$false] %s700_s17 }
  0x58   : > { %s702_s1 = scalar_lea.vmem %s701_s17, 256  ;;  %p703_p2 = scmp.lt.s32.totalorder %s196_s10, %s701_s17 }
  0x59   : > { %p698_p11 = pnand %p696_p7, %p1033_p8  ;;  %p704_p0 = scmp.lt.s32.totalorder %s702_s1, %s695_s8 }
  0x5b   : > { %p699_p9 = pneg %p698_p11  ;;  %p705_p6 = por %p704_p0, %p703_p2 }
  0x5d   : > { %p706_p1 = pnand %p705_p6, %p699_p9 }
  0x5f   : > { %709 = shalt.err (!%p706_p1)
}
  0x60   : > { %p1237_p4 = scmp.ne.s32.totalorder %s1231_s24, 0  ;;  %s1094_s4 = scalar_lea.hbm %s1205_s2, %s1004_s5 }
  0x61   : > { %s228_s17 = scalar_lea.vmem [#allocation8], %s1008_s6  ;;  %s710_s28 = scalar_lea.hbm %s1094_s4, 128 }
  0x62   : > { %548 = dma.hbm_to_vmem [thread:$0]  (!%p1237_p4), %s1068_s29, 128, %s196_s10, %s181_s26  }
  0x63   : > { %s239_s11 = sshll.u32 %s228_s17, 4  ;;  %p711_p6 = scmp.ne.s32.totalorder %s1094_s4, %s710_s28  ;;  %s240_s11 = int_to_ptr.vmem [resolvable:$true] %s239_s11 }
  0x64   : > { %s715_s29 = scalar_lea.hbm %s1205_s2, 384  ;;  %p716_p5 = scmp.lt.u32.totalorder %s1094_s4, %s1205_s2 }
  0x65   : > { %p713_p0 = pnand %p711_p6, %p1033_p8  ;;  %p717_p10 = scmp.lt.u32.totalorder %s715_s29, %s710_s28 }
  0x66   : > { %p719_p13 = scmp.lt.u32.totalorder %s710_s28, %s1094_s4 }
  0x67   : > { %p714_p3 = pneg %p713_p0  ;;  %p718_p12 = por %p717_p10, %p716_p5 }
  0x69   : > { %p720_p7 = por %p719_p13, %p718_p12 }
  0x6b   : > { %p721_p11 = pnand %p720_p7, %p714_p3 }
  0x6d   : > { %724 = shalt.err (!%p721_p11)
}
  0x6e   : > { %s725_s5 = scalar_lea.vmem %s240_s11, 128  ;;  %s870_s6 = smov [#allocation8]  }
  0x6f   : > { %p726_p9 = scmp.ne.s32.totalorder %s240_s11, %s725_s5  ;;  %s730_s1 = sshll.u32 %s870_s6, 4  ;;  %s731_s1 = int_to_ptr.vmem [resolvable:$false] %s730_s1 }
  0x70   : > { %s732_s14 = scalar_lea.vmem %s731_s1, 256  ;;  %p733_p6 = scmp.lt.s32.totalorder %s240_s11, %s731_s1 }
  0x71   : > { %p728_p2 = pnand %p726_p9, %p1033_p8  ;;  %p734_p0 = scmp.lt.s32.totalorder %s732_s14, %s725_s5 }
  0x73   : > { %p729_p1 = pneg %p728_p2  ;;  %p735_p4 = por %p734_p0, %p733_p6 }
  0x75   : > { %p736_p5 = pnand %p735_p4, %p729_p1 }
  0x77   : > { %739 = shalt.err (!%p736_p5)
}
  0x78   : > { %p1238_p10 = scmp.ne.s32.totalorder %s1231_s24, 0  ;;  %p1239_p3 = scmp.ne.s32.totalorder %s1235_s25, 0 }
  0x79   : > { %s250_s21 = sand.u32 (!%p1239_p3), 1, %s842_s16   ;;  %p1240_p8 = scmp.ne.s32.totalorder (!%p1239_p3), %s1226_s7, 0 }
  0x7a   : > { %554 = dma.hbm_to_vmem [thread:$0]  (!%p1238_p10), %s1094_s4, 128, %s240_s11, %s1027_s30  }
  0x7b   : > { %248 = sbr.rel (%p1239_p3) target bundleno = 542 (0x21e), region = 32  ;;  %s523_s9 = sshll.u32 (!%p1239_p3), %s250_s21, 3 }
  0x7c   : > { %s251_s17 = scalar_lea.sflag (!%p1239_p3), [#allocation4], %s250_s21  ;;  %s254_s28 = scalar_lea.vmem (!%p1239_p3), [#allocation3], %s523_s9 }
  0x82   : > { %813 = dma.done.wait (%p1240_p8), %s251_s17, 128  }
  0x83   : > { %815 = vsyncadd (%p1240_p8), %s251_s17, 4294967168  ;;  %s259_s24 = sand.u32 1, %s949_s23   ;;  %s263_s20 = scalar_lea.vmem [#allocation6], %s523_s9 }
  0x84   : > { %s260_s8 = scalar_lea.sflag [#allocation7], %s259_s24 }
  0x85   : > { %817 = dma.done.wait (%p1240_p8), %s260_s8, 256  }
  0x86   : > { %819 = vsyncadd (%p1240_p8), %s260_s8, 4294967040  ;;  %s302_s30 = sand.u32 1, %s830_s13   ;;  %s272_s4 = scalar_lea.vmem [#allocation8], %s523_s9 }
  0x87   : > { %s1130_s25 = sshll.u32 %s302_s30, 3  ;;  %p527_p4 = scmp.ne.s32.totalorder %s850_s18, 0 }
  0x88   : > { %s304_s11 = scalar_lea.vmem [#allocation9], %s1130_s25  ;;  %vm321_vm0 = vcmask (!%p527_p4), 7168   ;;  %v871_v0 = vmov (!%p527_p4), 0.0  }
  0x89   : > { %320 = sbr.rel (%p527_p4) target bundleno = 144 (0x90), region = 48  ;;  %322 = vst.msk [vmem:[#allocation2] sm:$0xff] (!%p527_p4), %vm321_vm0, %v871_v0 }
  0x90 PF: > { %v323_v1 = vld [vmem:[%s254_s28] sm:$0xff]  ;;  %v324_v2 = vld [vmem:[%s263_s20] sm:$0xff]  ;;  %s528_s23 = sshll.u32 %s854_s19, 1  ;;  %v339_v9 = vlaneseq  ;;  %vm346_vm2 = vcmask 7168   ;;  %p530_p12 = scmp.ne.s32.totalorder %s850_s18, 1 }
  0x91   : > { %v325_v3 = vld [vmem:[%s272_s4] sm:$0xff]  ;;  %v327_v4 = vmul.f32 2.0, %v323_v1  ;;  %s337_s7 = sadd.s32 %s850_s18, %s528_s23  ;;  %v335_v16 = vld [vmem:[#allocation2] sm:$0xff] }
  0x92   : > { %v326_v5 = vsub.f32 %v325_v3, %v324_v2  ;;  %s529_s29 = sshll.u32 %s337_s7, 3  ;;  %v340_v10 = vshrl.u32 %v339_v9, 7 }
  0x93   : > { %v328_v6 = vsub.f32 %v327_v4, %v324_v2  ;;  %v341_v11 = vstv %s529_s29 }
  0x94   : > { %v342_v12 = vadd.s32 %v341_v11, %v340_v10 }
  0x95   : > { %v329_v7 = vsub.f32 %v328_v6, %v325_v3 }
  0x96   : > { %vm343_vm1 = vcmp.lt.s32.totalorder %v342_v12, 20 }
  0x97   : > { %v330_v8 = vmul.f32 %v329_v7, %v326_v5 }
  0x99   : > { %331 = vadd.xlane.f32.xlu0 %v330_v8 }
 0x126   : > { %v332_v13 = vpop.xlane.xlu0 %331 }
 0x127   : > { %v333_v14 = vadd.f32 0.5, %v332_v13 }
 0x128   : > { %351 = sbr.rel (%p530_p12) target bundleno = 517 (0x205), region = 52 }
 0x129   : > { %v334_v15 = vmax.f32 %v333_v14, 0.0 }
 0x12b   : > { %v344_v17 = vsel %vm343_vm1, %v334_v15, 0.0 }
 0x12c   : > { %v345_v18 = vadd.f32 %v344_v17, %v335_v16 }
 0x12e   : > { %347 = vst.msk [vmem:[#allocation2] sm:$0xff] %vm346_vm2, %v345_v18 }
 0x135   : > { %v352_v19 = vld [vmem:[#allocation2] sm:$0xff] }
 0x136   : > { %v353_v20 = vsel %vm346_vm2, %v352_v19, 0.0 }
 0x137   : > { %354 = vadd.xlane.f32.xlu0 %v353_v20 }
 0x1c4   : > { %v355_v21 = vpop.xlane.xlu0 %354 }
 0x1c5   : > { %v356_v22 = vrot.slane %v355_v21, 4 }
 0x1c7   : > { %v357_v23 = vadd.f32 %v356_v22, %v355_v21 }
 0x1c9   : > { %v358_v24 = vrot.slane %v357_v23, 2 }
 0x1cb   : > { %v359_v25 = vadd.f32 %v358_v24, %v357_v23 }
 0x1cd   : > { %v360_v26 = vrot.slane %v359_v25, 1 }
 0x1cf   : > { %v361_v27 = vadd.f32 %v360_v26, %v359_v25 }
 0x1d1   : > { %535 = vpush %v361_v27 }
 0x202   : > { %s536_s10 = spop %535 }
 0x203   : > { %v363_v28 = vstv %s536_s10 }
 0x204   : > { %364 = vst [vmem:[%s304_s11] sm:$0xff] %v363_v28 }
 0x205 PF: > { %s532_s18 = sshll.u32 %s854_s19, 7  ;;  %s379_s1 = sshll.u32 %s304_s11, 4  ;;  %s380_s1 = int_to_ptr.vmem [resolvable:$true] %s379_s1 }
 0x206   : > { %s1143_s6 = scalar_lea.hbm %s1206_s3, %s532_s18  ;;  %s366_s14 = scalar_lea.sflag [#allocation5], %s302_s30 }
 0x207   : > { %s740_s21 = scalar_lea.vmem %s380_s1, 128  ;;  %p1241_p7 = scmp.ne.s32.totalorder %s1229_s15, 0 }
 0x208   : > { %p741_p13 = scmp.ne.s32.totalorder %s380_s1, %s740_s21  ;;  %s872_s9 = smov [#allocation9]  }
 0x209   : > { %s744_s17 = sshll.u32 %s872_s9, 4  ;;  %s745_s17 = int_to_ptr.vmem [resolvable:$false] %s744_s17 }
 0x20a   : > { %p742_p11 = pnand %p741_p13, %p1241_p7  ;;  %s746_s28 = scalar_lea.vmem %s745_s17, 256 }
 0x20b   : > { %p747_p2 = scmp.lt.s32.totalorder %s380_s1, %s745_s17  ;;  %p748_p1 = scmp.lt.s32.totalorder %s746_s28, %s740_s21 }
 0x20c   : > { %p743_p9 = pneg %p742_p11 }
 0x20d   : > { %p749_p6 = por %p748_p1, %p747_p2 }
 0x20f   : > { %p750_p0 = pnand %p749_p6, %p743_p9 }
 0x211   : > { %753 = shalt.err (!%p750_p0)
}
 0x212   : > { %s754_s19 = scalar_lea.hbm %s1143_s6, 128  ;;  %s758_s20 = scalar_lea.hbm %s1206_s3, 256 }
 0x213   : > { %p755_p5 = scmp.ne.s32.totalorder %s1143_s6, %s754_s19  ;;  %p759_p8 = scmp.lt.u32.totalorder %s1143_s6, %s1206_s3 }
 0x214   : > { %p760_p4 = scmp.lt.u32.totalorder %s758_s20, %s754_s19  ;;  %p762_p13 = scmp.lt.u32.totalorder %s754_s19, %s1143_s6 }
 0x215   : > { %p756_p10 = pnand %p755_p5, %p1241_p7 }
 0x216   : > { %p761_p12 = por %p760_p4, %p759_p8 }
 0x217   : > { %p757_p3 = pneg %p756_p10 }
 0x218   : > { %p763_p11 = por %p762_p13, %p761_p12 }
 0x21a   : > { %p764_p9 = pnand %p763_p11, %p757_p3 }
 0x21c   : > { %767 = shalt.err (!%p764_p9)
}
 0x21d   : > { %543 = dma.vmem_to_hbm [thread:$0]  (%p1241_p7), %s380_s1, 128, %s1143_s6, %s366_s14  }
 0x21e PF: > { %p560_p2 = scmp.ge.s32.totalorder %s866_s22, 2  ;;  %s391_s4 = sand.u32 1, %s826_s12  }
 0x21f   : > { %p1242_p1 = scmp.ne.s32.totalorder %s1230_s27, 0  ;;  %s392_s11 = scalar_lea.sflag [#allocation5], %s391_s4 }
 0x221   : > { %p556_p6 = pnand %p560_p2, %p1242_p1 }
 0x223   : > { %821 = dma.done.wait (!%p556_p6), %s392_s11, 128  }
 0x224   : > { %823 = vsyncadd (!%p556_p6), %s392_s11, 4294967168  ;;  %s22_s22 = sadd.s32 1, %s866_s22   ;;  %s1243_s23 = sld [smem:[#allocation13_spill]] }
 0x225   : > { %p19_p0 = scmp.ge.s32.totalorder %s22_s22, 6   ;;  %s1244_s14 = sld [smem:[#allocation19_spill]] }
 0x226   : > { %s1245_s7 = sld [smem:[#allocation14_spill]]  ;;  %s1246_s17 = sld [smem:[#allocation20_spill]] }
 0x227   : > { %s1247_s18 = sld [smem:[#allocation15_spill]]  ;;  %s1248_s19 = sld [smem:[#allocation16_spill]] }
 0x228   : > { %s1249_s20 = sld [smem:[#allocation17_spill]]  ;;  %s1250_s21 = sld [smem:[#allocation18_spill]] }
 0x229   : > { %s1251_s12 = smov %s830_s13  ;;  %s1253_s15 = smov %s842_s16 }
 0x22a   : > { %s1252_s13 = smov %s1243_s23  ;;  %21 = sbr.rel (!%p19_p0) target bundleno = 13 (0xd), region = 109 }
 0x22c   : > { %s1254_s16 = smov %s1245_s7 }
 0x231   :  { %397 = vsyncpa [#allocation4], 1 }
 0x232   :  { %399 = vsyncpa [#allocation4 + $0x1], 1 }
 0x233   :  { %400 = vsyncpa [#allocation7], 1 }
 0x234   :  { %402 = vsyncpa [#allocation7 + $0x1], 1 }
 0x235   :  { %403 = vsyncpa [#allocation5], 1 }
 0x236   :  { %405 = vsyncpa [#allocation5 + $0x1], 1 }

</bundles_post_ra>
